<compile_context>
chip_gen: v6e
topology: v6e:2x2x1
jax: 0.10.0
libtpu: 0.0.40
codegen_flags: <defaults>
</compile_context>

<pallas_src>
import functools

import jax
import jax.numpy as jnp
from jax.experimental import pallas as pl
from jax.experimental.pallas import tpu as pltpu

SIM_WEIGHT = 0.8
CLASS_WEIGHT = 0.2
LANES = 128


def _sum11(x):
    """Reduce a 2-D f32 array to (1, 1): sublane reduce then lane reduce."""
    return jnp.sum(jnp.sum(x, axis=0, keepdims=True), axis=1, keepdims=True)


def _fold8(x):
    """(R, L) -> (8, L) by summing groups of 8 rows (vreg-wise VALU adds only)."""
    r = x.shape[0]
    if r == 8:
        return x
    return jnp.sum(x.reshape(r // 8, 8, x.shape[1]), axis=0)


def _partials(sim, lab, c1, c2, valid):
    """Elementwise partials for one chunk (all inputs already f32, same shape).

    Returns (sq, cnt, bce) elementwise arrays:
      sq  = masked squared error (label > 0 samples only)
      cnt = masked-sample indicator (float)
      bce = per-element BCE-with-logits of 0.5*(c1+c2) vs (label > 0)
    `valid` is an optional bool mask excluding padding / out-of-bounds lanes.
    """
    mask = lab > 0.0
    if valid is not None:
        mask = jnp.logical_and(mask, valid)
    maskf = mask.astype(jnp.float32)
    diff = jnp.where(mask, sim - lab, 0.0)          # where, not multiply (NaN parity)
    sq = diff * diff
    x = 0.5 * (c1 + c2)                             # mean of the two logits
    bce = jnp.maximum(x, 0.0) - x * maskf + jnp.log1p(jnp.exp(-jnp.abs(x)))
    if valid is not None:
        bce = jnp.where(valid, bce, 0.0)
    return sq, maskf, bce


def _finalize(sq_s, cnt_s, bce_s, batch):
    sim_loss = jnp.where(cnt_s > 0.0,
                         sq_s / jnp.maximum(cnt_s, 1.0),
                         jnp.zeros_like(sq_s))
    class_loss = bce_s * (1.0 / batch)
    return SIM_WEIGHT * sim_loss + CLASS_WEIGHT * class_loss


def _resident_kernel(sim_ref, lab_ref, c1_ref, c2_ref, out_ref, *, batch):
    """Whole problem resident in VMEM; block == full array, so no padding mask."""
    sim = sim_ref[...].astype(jnp.float32)
    lab = lab_ref[...].astype(jnp.float32)
    c1 = c1_ref[...].astype(jnp.float32)
    c2 = c2_ref[...].astype(jnp.float32)
    sq, cnt, bce = _partials(sim, lab, c1, c2, None)
    out_ref[...] = _finalize(_sum11(sq), _sum11(cnt), _sum11(bce), batch)


def _tiled_kernel(sim_ref, lab_ref, c1_ref, c2_ref, out_ref,
                  sq_acc, cnt_acc, bce_acc, *,
                  batch, rows_per_tile, chunk_rows):
    """Grid over row tiles; chunked accumulation into (8,128) VMEM accumulators."""
    i = pl.program_id(0)
    n_chunks = rows_per_tile // chunk_rows
    tile_row0 = i * rows_per_tile

    @pl.when(i == 0)
    def _():
        sq_acc[...] = jnp.zeros_like(sq_acc)
        cnt_acc[...] = jnp.zeros_like(cnt_acc)
        bce_acc[...] = jnp.zeros_like(bce_acc)

    def accumulate(masked):
        def body(c, carry):
            r0 = pl.multiple_of(c * chunk_rows, chunk_rows)
            sim = sim_ref[pl.ds(r0, chunk_rows), :].astype(jnp.float32)
            lab = lab_ref[pl.ds(r0, chunk_rows), :].astype(jnp.float32)
            c1 = c1_ref[pl.ds(r0, chunk_rows), :].astype(jnp.float32)
            c2 = c2_ref[pl.ds(r0, chunk_rows), :].astype(jnp.float32)
            if masked:
                row = jax.lax.broadcasted_iota(jnp.int32, (chunk_rows, LANES), 0)
                lane = jax.lax.broadcasted_iota(jnp.int32, (chunk_rows, LANES), 1)
                g = (tile_row0 + c * chunk_rows + row) * LANES + lane
                valid = g < batch
            else:
                valid = None
            sq, cnt, bce = _partials(sim, lab, c1, c2, valid)
            # Pure elementwise (VALU) accumulation; no per-step XLU reduction.
            sq_acc[...] += _fold8(sq)
            cnt_acc[...] += _fold8(cnt)
            bce_acc[...] += _fold8(bce)
            return carry

        jax.lax.fori_loop(0, n_chunks, body, 0, unroll=True)

    # Full tiles (all elements < batch) take the cheap unmasked path; only the
    # final partial tile pays for the iota/compare/select mask work.
    tile_end_elem = (tile_row0 + rows_per_tile) * LANES

    @pl.when(tile_end_elem <= batch)
    def _():
        accumulate(masked=False)

    @pl.when(tile_end_elem > batch)
    def _():
        accumulate(masked=True)

    @pl.when(i == pl.num_programs(0) - 1)
    def _():
        out_ref[...] = _finalize(_sum11(sq_acc[...]),
                                 _sum11(cnt_acc[...]),
                                 _sum11(bce_acc[...]),
                                 batch)


def pairwise_loss(outputs, label, *, rows_per_tile=2048, resident_max_rows=256):
    """JAX/Pallas equivalent of PairwiseLoss.forward(outputs, label)."""
    sim = outputs["similarity"].reshape(-1)
    c1 = outputs["is_cloth1"].reshape(-1)
    c2 = outputs["is_cloth2"].reshape(-1)
    lab = label.reshape(-1)
    B = int(lab.shape[0])
    rows = pl.cdiv(B, LANES)

    if rows <= resident_max_rows:
        # Small batch: zero host copies (free reshapes), one grid-less launch.
        shape2d = (rows, LANES) if B % LANES == 0 else (1, B)
        args = [a.reshape(shape2d) for a in (sim, lab, c1, c2)]
        out = pl.pallas_call(
            functools.partial(_resident_kernel, batch=B),
            out_shape=jax.ShapeDtypeStruct((1, 1), jnp.float32),
            in_specs=[pl.BlockSpec(memory_space=pltpu.MemorySpace.VMEM)] * 4,
            out_specs=pl.BlockSpec(memory_space=pltpu.MemorySpace.VMEM),
        )(*args)
    else:
        # Large batch: tiled accumulate-and-finalize grid over row tiles.
        rpt = min(int(rows_per_tile), rows)
        rpt = max(8, ((rpt + 7) // 8) * 8)          # sublane-aligned tile rows

        Bp = rows * LANES
        def prep(a):
            if Bp != B:                              # zero-pad only the last row
                a = jnp.pad(a, (0, Bp - B))
            return a.reshape(rows, LANES)            # free when B % 128 == 0

        args = [prep(a) for a in (sim, lab, c1, c2)]
        n_tiles = pl.cdiv(rows, rpt)                 # partial last block allowed

        chunk_rows = min(rpt, 512)                   # bound per-chunk vreg/VMEM use
        if rpt % chunk_rows != 0:
            chunk_rows = rpt

        out = pl.pallas_call(
            functools.partial(_tiled_kernel, batch=B,
                              rows_per_tile=rpt, chunk_rows=chunk_rows),
            out_shape=jax.ShapeDtypeStruct((1, 1), jnp.float32),
            grid_spec=pltpu.PrefetchScalarGridSpec(
                num_scalar_prefetch=0,
                grid=(n_tiles,),
                in_specs=[pl.BlockSpec((rpt, LANES), lambda i: (i, 0))] * 4,
                out_specs=pl.BlockSpec((1, 1), lambda i: (0, 0)),
                scratch_shapes=[pltpu.VMEM((8, LANES), jnp.float32)] * 3),
            compiler_params=pltpu.CompilerParams(
                dimension_semantics=("arbitrary",),
                vmem_limit_bytes=32 << 20),
        )(*args)
    return out[0, 0]


def pairwise_loss_ref(outputs, label):
    """Pure-JAX reference mirroring the PyTorch forward."""
    sim = outputs["similarity"].reshape(-1).astype(jnp.float32)
    lab = label.reshape(-1).astype(jnp.float32)
    mask = lab > 0.0
    cnt = jnp.sum(mask.astype(jnp.float32))
    diff = jnp.where(mask, sim - lab, 0.0)
    sim_loss = jnp.where(cnt > 0.0,
                         jnp.sum(diff * diff) / jnp.maximum(cnt, 1.0),
                         0.0)
    x = 0.5 * (outputs["is_cloth1"].reshape(-1).astype(jnp.float32)
               + outputs["is_cloth2"].reshape(-1).astype(jnp.float32))
    y = mask.astype(jnp.float32)
    bce = jnp.maximum(x, 0.0) - x * y + jnp.log1p(jnp.exp(-jnp.abs(x)))
    class_loss = jnp.mean(bce)
    return SIM_WEIGHT * sim_loss + CLASS_WEIGHT * class_loss


def _make_inputs(key, B, dtype=jnp.float32):
    k_sim, k_c1, k_c2, k_lab = jax.random.split(key, 4)
    outputs = {
        "similarity": jax.random.uniform(k_sim, (B, 1), jnp.float32).astype(dtype),
        "is_cloth1": jax.random.normal(k_c1, (B, 1), jnp.float32).astype(dtype),
        "is_cloth2": jax.random.normal(k_c2, (B, 1), jnp.float32).astype(dtype),
    }
    pos = jax.random.uniform(k_lab, (B,), jnp.float32, minval=0.1, maxval=1.0)
    label = jnp.where(jnp.arange(B) % 2 == 0, pos, 0.0)
    return outputs, label


if __name__ == "__main__":
    key = jax.random.PRNGKey(0)
    k1, k2, k3, k4 = jax.random.split(key, 4)

    # --- small batch: grid-less resident path, (1, B) layout ---
    B = 8
    outputs, label = _make_inputs(k1, B)
    loss = pairwise_loss(outputs, label)
    jax.block_until_ready(loss)
    ref = pairwise_loss_ref(outputs, label)
    assert jnp.allclose(loss, ref, rtol=1e-5, atol=1e-6), ("small", loss, ref)

    # --- no valid similarity pairs (sim_loss == 0 branch) ---
    loss0 = pairwise_loss(outputs, jnp.zeros_like(label))
    ref0 = pairwise_loss_ref(outputs, jnp.zeros_like(label))
    jax.block_until_ready(loss0)
    assert jnp.allclose(loss0, ref0, rtol=1e-5, atol=1e-6), ("zero", loss0, ref0)

    # --- resident path, lane-aligned (rows, 128) layout ---
    B1 = 256
    outputs1, label1 = _make_inputs(k2, B1)
    loss1 = pairwise_loss(outputs1, label1)
    jax.block_until_ready(loss1)
    ref1 = pairwise_loss_ref(outputs1, label1)
    assert jnp.allclose(loss1, ref1, rtol=1e-5, atol=1e-6), ("res128", loss1, ref1)

    # --- non-multiple-of-128 batch forced through the tiled grid path ---
    B2 = 3000
    outputs2, label2 = _make_inputs(k3, B2)
    loss2 = pairwise_loss(outputs2, label2, rows_per_tile=8, resident_max_rows=4)
    jax.block_until_ready(loss2)
    ref2 = pairwise_loss_ref(outputs2, label2)
    assert jnp.allclose(loss2, ref2, rtol=1e-4, atol=1e-5), ("tiled", loss2, ref2)

    # --- default tiled path (partial final tile, chunked masked accumulation) ---
    B3 = 128 * 300
    outputs3, label3 = _make_inputs(k4, B3)
    loss3 = pairwise_loss(outputs3, label3)
    jax.block_until_ready(loss3)
    ref3 = pairwise_loss_ref(outputs3, label3)
    assert jnp.allclose(loss3, ref3, rtol=1e-4, atol=1e-5), ("tiled_dflt", loss3, ref3)

    print("KERNEL_OK")
</pallas_src>

<mosaic_0001>
module attributes {stable_mosaic.version = 11 : i64} {
  func.func @_resident_kernel(%arg0: memref<1x8xf32, #tpu.memory_space<vmem>>, %arg1: memref<1x8xf32, #tpu.memory_space<vmem>>, %arg2: memref<1x8xf32, #tpu.memory_space<vmem>>, %arg3: memref<1x8xf32, #tpu.memory_space<vmem>>, %arg4: memref<1x1xf32, #tpu.memory_space<vmem>>) attributes {dimension_semantics = [], scalar_prefetch = 0 : i64, scratch_operands = 0 : i64, tpu.core_type = #tpu.core_type<tc>} {
    %c0 = arith.constant 0 : index
    %c0_0 = arith.constant 0 : index
    %0 = vector.load %arg0[%c0, %c0_0] : memref<1x8xf32, #tpu.memory_space<vmem>>, vector<1x8xf32>
    %c0_1 = arith.constant 0 : index
    %c0_2 = arith.constant 0 : index
    %1 = vector.load %arg1[%c0_1, %c0_2] : memref<1x8xf32, #tpu.memory_space<vmem>>, vector<1x8xf32>
    %c0_3 = arith.constant 0 : index
    %c0_4 = arith.constant 0 : index
    %2 = vector.load %arg2[%c0_3, %c0_4] : memref<1x8xf32, #tpu.memory_space<vmem>>, vector<1x8xf32>
    %c0_5 = arith.constant 0 : index
    %c0_6 = arith.constant 0 : index
    %3 = vector.load %arg3[%c0_5, %c0_6] : memref<1x8xf32, #tpu.memory_space<vmem>>, vector<1x8xf32>
    %cst = arith.constant 0.000000e+00 : f32
    %4 = vector.broadcast %cst : f32 to vector<1x8xf32>
    %5 = arith.cmpf ogt, %1, %4 : vector<1x8xf32>
    %6 = arith.extui %5 : vector<1x8xi1> to vector<1x8xi32>
    %7 = arith.sitofp %6 : vector<1x8xi32> to vector<1x8xf32>
    %8 = arith.subf %0, %1 : vector<1x8xf32>
    %cst_7 = arith.constant 0.000000e+00 : f32
    %9 = vector.broadcast %cst_7 : f32 to vector<1x8xf32>
    %10 = arith.select %5, %8, %9 : vector<1x8xi1>, vector<1x8xf32>
    %11 = arith.mulf %10, %10 : vector<1x8xf32>
    %12 = arith.addf %2, %3 : vector<1x8xf32>
    %cst_8 = arith.constant 5.000000e-01 : f32
    %13 = vector.broadcast %cst_8 : f32 to vector<1x8xf32>
    %14 = arith.mulf %13, %12 : vector<1x8xf32>
    %cst_9 = arith.constant 0.000000e+00 : f32
    %15 = vector.broadcast %cst_9 : f32 to vector<1x8xf32>
    %16 = arith.maximumf %14, %15 : vector<1x8xf32>
    %17 = arith.mulf %14, %7 : vector<1x8xf32>
    %18 = arith.subf %16, %17 : vector<1x8xf32>
    %19 = math.absf %14 : vector<1x8xf32>
    %cst_10 = arith.constant 0.000000e+00 : f32
    %20 = vector.broadcast %cst_10 : f32 to vector<1x8xf32>
    %21 = arith.subf %20, %19 : vector<1x8xf32>
    %22 = math.exp %21 : vector<1x8xf32>
    %23 = math.log1p %22 : vector<1x8xf32>
    %24 = arith.addf %18, %23 : vector<1x8xf32>
    %cst_11 = arith.constant dense<0.000000e+00> : vector<8xf32>
    %25 = vector.multi_reduction <add>, %11, %cst_11 [0] : vector<1x8xf32> to vector<8xf32>
    %26 = vector.shape_cast %25 : vector<8xf32> to vector<1x8xf32>
    %cst_12 = arith.constant dense<0.000000e+00> : vector<1xf32>
    %27 = vector.multi_reduction <add>, %26, %cst_12 [1] : vector<1x8xf32> to vector<1xf32>
    %28 = vector.shape_cast %27 : vector<1xf32> to vector<1x1xf32>
    %cst_13 = arith.constant dense<0.000000e+00> : vector<8xf32>
    %29 = vector.multi_reduction <add>, %7, %cst_13 [0] : vector<1x8xf32> to vector<8xf32>
    %30 = vector.shape_cast %29 : vector<8xf32> to vector<1x8xf32>
    %cst_14 = arith.constant dense<0.000000e+00> : vector<1xf32>
    %31 = vector.multi_reduction <add>, %30, %cst_14 [1] : vector<1x8xf32> to vector<1xf32>
    %32 = vector.shape_cast %31 : vector<1xf32> to vector<1x1xf32>
    %cst_15 = arith.constant dense<0.000000e+00> : vector<8xf32>
    %33 = vector.multi_reduction <add>, %24, %cst_15 [0] : vector<1x8xf32> to vector<8xf32>
    %34 = vector.shape_cast %33 : vector<8xf32> to vector<1x8xf32>
    %cst_16 = arith.constant dense<0.000000e+00> : vector<1xf32>
    %35 = vector.multi_reduction <add>, %34, %cst_16 [1] : vector<1x8xf32> to vector<1xf32>
    %36 = vector.shape_cast %35 : vector<1xf32> to vector<1x1xf32>
    %cst_17 = arith.constant 0.000000e+00 : f32
    %37 = vector.broadcast %cst_17 : f32 to vector<1x1xf32>
    %38 = arith.cmpf ogt, %32, %37 : vector<1x1xf32>
    %cst_18 = arith.constant 1.000000e+00 : f32
    %39 = vector.broadcast %cst_18 : f32 to vector<1x1xf32>
    %40 = arith.maximumf %32, %39 : vector<1x1xf32>
    %41 = arith.divf %28, %40 : vector<1x1xf32>
    %cst_19 = arith.constant 0.000000e+00 : f32
    %42 = vector.broadcast %cst_19 : f32 to vector<1x1xf32>
    %43 = arith.select %38, %41, %42 : vector<1x1xi1>, vector<1x1xf32>
    %cst_20 = arith.constant 1.250000e-01 : f32
    %44 = vector.broadcast %cst_20 : f32 to vector<1x1xf32>
    %45 = arith.mulf %36, %44 : vector<1x1xf32>
    %cst_21 = arith.constant 8.000000e-01 : f32
    %46 = vector.broadcast %cst_21 : f32 to vector<1x1xf32>
    %47 = arith.mulf %46, %43 : vector<1x1xf32>
    %cst_22 = arith.constant 2.000000e-01 : f32
    %48 = vector.broadcast %cst_22 : f32 to vector<1x1xf32>
    %49 = arith.mulf %48, %45 : vector<1x1xf32>
    %50 = arith.addf %47, %49 : vector<1x1xf32>
    %c0_23 = arith.constant 0 : index
    %c0_24 = arith.constant 0 : index
    %51 = vector.load %arg4[%c0_23, %c0_24] : memref<1x1xf32, #tpu.memory_space<vmem>>, vector<1x1xf32>
    tpu.vector_store %arg4[%c0_23, %c0_24], %50 {strides = array<i32>} : memref<1x1xf32, #tpu.memory_space<vmem>>, vector<1x1xf32>,
    return
  }
}

</mosaic_0001>

<bundles_post_ra>
// kernel: tpu_custom_call.1
= control target key start
LH: loop header
LB: loop body
LE: loop exit
PB: predicated region body
PF: predicated region fallthrough
CT: control target
= control target key end

     0   :  { %9 = vsyncpa [#allocation3], 0  ;;  %s198_s0 = inlined_call_operand.hbm [shape: f32[1,8], index: 0, kind: input, shape index: {}]   ;;  %s199_s1 = inlined_call_operand.vmem [shape: f32[1,8], index: 1, kind: input, shape index: {}]   ;;  %s200_s2 = inlined_call_operand.vmem [shape: f32[1,8], index: 2, kind: input, shape index: {}]   ;;  %s201_s3 = inlined_call_operand.vmem [shape: f32[1,8], index: 3, kind: input, shape index: {}]   ;;  %s202_s4 = inlined_call_operand.hbm [shape: f32[1,1], index: 4, kind: output, shape index: {}]  }
   0x1   :  { %10 = vsyncpa [#allocation4], 0  ;;  %s152_s15 = smov [#allocation2]  }
   0x2   :  { %s17_s16 = sshll.u32 %s152_s15, 4  ;;  %s18_s16 = int_to_ptr.vmem [resolvable:$true] %s17_s16 }
   0x3   :  { %s116_s17 = scalar_lea.vmem %s18_s16, 16  ;;  %s120_s18 = scalar_lea.vmem %s18_s16, 32 }
   0x4   :  { %p117_p0 = scmp.ne.s32.totalorder %s18_s16, %s116_s17  ;;  %p121_p1 = scmp.lt.s32.totalorder %s18_s16, %s18_s16 }
   0x5   :  { %p122_p2 = scmp.lt.s32.totalorder %s120_s18, %s116_s17 }
   0x7   :  { %p123_p3 = por %p122_p2, %p121_p1 }
   0x9   :  { %p124_p4 = pnand %p123_p3, %p117_p0 }
   0xb   :  { %127 = shalt.err (!%p124_p4)
}
   0xc   :  { %20 = dma.hbm_to_vmem [thread:$0]  %s198_s0, 16, %s18_s16, [#allocation3]  }
   0xd   :  { %148 = dma.done.wait [#allocation3], 16  }
   0xe   :  { %149 = vsyncadd [#allocation3], 4294967280  ;;  %vm60_vm0 = vcmask 57344   ;;  %v31_v0 = vld [vmem:[%s199_s1] sm:$0x1]  ;;  %v153_v5 = vmov 0.0  }
   0xf   :  { %v32_v1 = vld [vmem:[%s200_s2] sm:$0x1]  ;;  %vm34_vm1 = vcmp.gt.f32.partialorder %v31_v0, 0.0  ;;  %s154_s0 = smov [#allocation5]   ;;  %vm81_vm4 = vcmask 0  }
  0x10   :  { %v33_v2 = vld [vmem:[%s201_s3] sm:$0x1]  ;;  %v98_v6 = vsel %vm34_vm1, 1.0, %v153_v5  ;;  %s89_s1 = sshll.u32 %s154_s0, 4  ;;  %s90_s1 = int_to_ptr.vmem [resolvable:$true] %s89_s1 }
  0x11   :  { %v40_v3 = vadd.f32 %v33_v2, %v32_v1  ;;  %v30_v4 = vld [vmem:[#allocation2] sm:$0x1]  ;;  %v65_v9 = vsel %vm60_vm0, %v98_v6, 0.0  ;;  %s128_s2 = scalar_lea.vmem %s90_s1, 16  ;;  %s132_s3 = scalar_lea.vmem %s90_s1, 32 }
  0x12   :  { %v37_v7 = vsub.f32 %v30_v4, %v31_v0  ;;  %66 = vadd.xlane.f32.xlu0 %v65_v9  ;;  %p129_p5 = scmp.ne.s32.totalorder %s90_s1, %s128_s2  ;;  %p133_p6 = scmp.lt.s32.totalorder %s90_s1, %s90_s1 }
  0x13   :  { %v41_v8 = vmul.f32 0.5, %v40_v3  ;;  %p134_p7 = scmp.lt.s32.totalorder %s132_s3, %s128_s2 }
  0x14   :  { %v38_v10 = vsel %vm34_vm1, %v37_v7, 0.0 }
  0x15   :  { %v45_v11 = vand.u32 2147483647, %v41_v8  ;;  %v39_v12 = vmul.f32 %v38_v10, %v38_v10  ;;  %v43_v20 = vmul.f32 %v98_v6, %v41_v8  ;;  %v42_v21 = vmax.f32 %v41_v8, 0.0  ;;  %p135_p8 = por %p134_p7, %p133_p6 }
  0x17   :  { %v46_v13 = vsub.f32 0.0, %v45_v11  ;;  %v61_v14 = vsel %vm60_vm0, %v39_v12, 0.0  ;;  %v44_v25 = vsub.f32 %v42_v21, %v43_v20  ;;  %p136_p9 = pnand %p135_p8, %p129_p5 }
  0x18   :  { %62 = vadd.xlane.f32.xlu0 %v61_v14 }
  0x19   :  { %v47_v15 = vmul.f32 1.442695, %v46_v13 }
  0x1b   :  { %102 = vpow2.f32 %v47_v15 }
  0x28   :  { %v103_v16 = vpop.eup %102 }
  0x29   :  { %v49_v17 = vadd.f32 1.0, %v103_v16  ;;  %v52_v18 = vmul.f32 -0.5, %v103_v16  ;;  %v55_v22 = vand.u32 2147483647, %v103_v16 }
  0x2b   :  { %104 = vlog2.f32 %v49_v17  ;;  %v53_v19 = vadd.f32 1.0, %v52_v18  ;;  %vm56_vm2 = vcmp.lt.f32.partialorder %v55_v22, 0.0004427343 }
  0x2d   :  { %v54_v23 = vmul.f32 %v103_v16, %v53_v19 }
  0x38   :  { %v105_v24 = vpop.eup %104 }
  0x39   :  { %v51_v26 = vmul.f32 0.6931472, %v105_v24 }
  0x3b   :  { %v57_v27 = vsel %vm56_vm2, %v54_v23, %v51_v26 }
  0x3c   :  { %v58_v28 = vadd.f32 %v57_v27, %v44_v25 }
  0x3e   :  { %v69_v29 = vsel %vm60_vm0, %v58_v28, 0.0 }
  0x3f   :  { %70 = vadd.xlane.f32.xlu1 %v69_v29 }
  0x9b   :  { %v67_v30 = vpop.xlane.xlu0 %66 }
  0x9c   :  { %v73_v31 = vmax.f32 %v67_v30, 1.0  ;;  %vm72_vm3 = vcmp.gt.f32.partialorder %v67_v30, 0.0 }
  0x9e   :  { %106 = vrcp.f32 %v73_v31 }
  0xa1   :  { %v63_v33 = vpop.xlane.xlu0 %62 }
  0xab   :  { %v107_v32 = vpop.eup %106 }
  0xac   :  { %v75_v34 = vmul.f32 %v107_v32, %v63_v33 }
  0xae   :  { %v76_v35 = vsel %vm72_vm3, %v75_v34, 0.0 }
  0xaf   :  { %v78_v38 = vmul.f32 0.8, %v76_v35 }
  0xc8   :  { %v71_v36 = vpop.xlane.xlu1 %70 }
  0xc9   :  { %v77_v37 = vmul.f32 0.125, %v71_v36 }
  0xcb   :  { %v79_v39 = vmul.f32 0.2, %v77_v37 }
  0xcd   :  { %v80_v40 = vadd.f32 %v79_v39, %v78_v38 }
  0xcf   :  { %82 = vst.msk [vmem:[#allocation5] sm:$0x1] %vm81_vm4, %v80_v40 }
  0xd0   :  { %139 = shalt.err (!%p136_p9)
}
  0xd1   :  { %92 = dma.vmem_to_hbm [thread:$0]  %s90_s1, 16, %s202_s4, [#allocation4]  }
  0xd2   :  { %150 = dma.done.wait [#allocation4], 16  }
  0xd3   :  { %151 = vsyncadd [#allocation4], 4294967280 }
  0xd4   :  { %96 = vsyncpa [#allocation3], 1 }
  0xd5   :  { %97 = vsyncpa [#allocation4], 1 }

</bundles_post_ra>
